<compile_context>
chip_gen: v6e
topology: v6e:2x2x1
jax: 0.10.0
libtpu: 0.0.40
codegen_flags: <defaults>
</compile_context>

<pallas_src>
import functools

import jax
import jax.numpy as jnp
from jax.experimental import pallas as pl
from jax.experimental.pallas import tpu as pltpu


# ----------------------------------------------------------------------------
# Fused Pallas kernel (factory: layer count / dtypes are static config)
# ----------------------------------------------------------------------------
def _make_fused_gcn_kernel(n_dense_layers, mxu_dtype):
    """Fused forward: n_dense_layers x (matmul + bias + ReLU), then a dout=1 head.

    Kernel argument order:
      x_ref   : (TB, F*E) activation tile (mxu_dtype, lane-dense)
      [w, b]  : per fused layer (GCN layers have adj pre-folded via kron)
      w_head  : (1, D_last) f32 row,  b_head : (1, 1) f32
      o_ref   : (TB, 1) f32
    """

    def kernel(x_ref, *refs):
        o_ref = refs[-1]
        params = refs[:-1]

        h = x_ref[...]                                    # (TB, Din) mxu_dtype
        p = 0
        # GCN layers (adj folded into the weight) and MLP hidden layers share
        # one form: h = relu(h @ W + b).  Matmuls feed the MXU in mxu_dtype with
        # f32 accumulation; bias + ReLU stay in f32 (v5e-safe).
        for _ in range(n_dense_layers):
            w_ref, b_ref = params[p], params[p + 1]
            p += 2
            z = jnp.dot(h, w_ref[...], preferred_element_type=jnp.float32)
            h = jnp.maximum(z + b_ref[...], 0.0).astype(mxu_dtype)

        # Final head (output dim 1): VPU multiply + lane reduce, avoiding a
        # 128-wide MXU pass with N=1.
        w_ref, b_ref = params[p], params[p + 1]
        y = jnp.sum(h.astype(jnp.float32) * w_ref[...], axis=-1, keepdims=True)
        # (TB, 1) store is lane-masked but tiny; a fully lane-dense (1, TB)
        # output would need a sublane->lane transpose of y -- not worth it here.
        o_ref[...] = (y + b_ref[...]).astype(o_ref.dtype)

    return kernel


# ----------------------------------------------------------------------------
# Plain-JAX glue (embedding lookup, adjacency normalization, parameter prep)
# ----------------------------------------------------------------------------
def normalize_adj(adj):
    """D^{-1/2} A^T D^{-1/2}, matching the torch reference."""
    rowsum = jnp.sum(adj, axis=-1)
    d_inv_sqrt = rowsum ** (-0.5)
    d_inv_sqrt = jnp.where(jnp.isinf(d_inv_sqrt), 0.0, d_inv_sqrt)
    d_mat = jnp.diag(d_inv_sqrt)
    return (adj @ d_mat).T @ d_mat


def _round_up(x, m):
    return (x + m - 1) // m * m


def _choose_batch_tile(B, batch_tile):
    b8 = _round_up(B, 8)
    if b8 <= batch_tile:
        # Mid-size batch fits in one tile: split in two once it's big enough so
        # the "parallel" grid axis can feed both v7x TensorCores.
        if b8 >= 256:
            return _round_up((B + 1) // 2, 8)
        return b8
    return batch_tile


def gcn_model_forward(params, ids, values, adj=None, *, batch_tile=512,
                      matmul_dtype=jnp.bfloat16):
    """ids: int32 (B, F), values: float32 (B, F) -> y: float32 (B,).

    matmul_dtype=bfloat16 (default) feeds the MXU in bf16 with f32 accumulation;
    this is a documented deviation from the f32 PyTorch reference.  Pass
    matmul_dtype=jnp.float32 for bit-closer parity.
    """
    emb = params["emb"]
    B, F = ids.shape
    E = emb.shape[1]

    # Embedding lookup * field value, emitted directly in the kernel's
    # lane-dense (B, F*E) layout (row-major over (field, emb) == torch's
    # h.reshape(B, -1)).  Gather + scale fuse into one XLA pass; no transpose
    # copy remains.
    # TODO(synk): fuse the gather itself into the kernel (scalar-prefetched ids
    # + manual DMA gather of embedding rows) to remove this HBM round-trip too.
    h0 = (emb[ids] * values[..., None]).reshape(B, F * E).astype(matmul_dtype)

    # Normalized adjacency (fully connected by default), f32.
    if adj is None:
        adj = jnp.ones((F, F), dtype=jnp.float32)
    adj_n = normalize_adj(adj.astype(jnp.float32))

    # Fold each GCN layer into ONE dense (F*Ein, F*Eout) matmul:
    #   relu(adj @ (h @ W) + b) == relu(h_flat @ kron(adj^T, W) + tile(b, F))
    flat = []
    for w, b in params["gcn"]:
        eout = int(w.shape[1])
        wk = jnp.kron(adj_n.T, w.astype(jnp.float32)).astype(matmul_dtype)
        bk = jnp.tile(b.astype(jnp.float32), (F,)).reshape(1, F * eout)
        flat += [wk, bk]
    for w, b in params["mlp"]:
        flat += [w.astype(matmul_dtype), b.reshape(1, -1).astype(jnp.float32)]
    n_dense = len(params["gcn"]) + len(params["mlp"])
    w_out, b_out = params["mlp_out"]
    flat += [w_out.reshape(1, -1).astype(jnp.float32),   # head as f32 row
             b_out.reshape(1, 1).astype(jnp.float32)]

    # Batch tiling along the sublane axis.  Padded rows carry relu(bias) != 0
    # activations but are sliced off after the kernel.
    TB = _choose_batch_tile(B, batch_tile)
    B_pad = _round_up(B, TB)
    G = B_pad // TB
    h0 = jnp.pad(h0, ((0, B_pad - B), (0, 0)))

    kernel = _make_fused_gcn_kernel(n_dense, matmul_dtype)

    in_specs = [pl.BlockSpec((TB, F * E), lambda i: (i, 0))]
    # Weights/biases: whole-array blocks with a constant index map (fetched once,
    # resident in VMEM across all batch tiles).
    in_specs += [pl.BlockSpec(arr.shape, lambda i: (0, 0)) for arr in flat]

    out = pl.pallas_call(
        kernel,
        out_shape=jax.ShapeDtypeStruct((B_pad, 1), jnp.float32),
        grid=(G,),
        in_specs=in_specs,
        out_specs=pl.BlockSpec((TB, 1), lambda i: (i, 0)),
        compiler_params=pltpu.CompilerParams(
            dimension_semantics=("parallel",)),
    )(h0, *flat)

    return out[:B, 0]                           # drop batch padding, squeeze(1)


# ----------------------------------------------------------------------------
# Pure-JAX reference (mirrors the PyTorch forward in eval mode) + init
# ----------------------------------------------------------------------------
def gcn_model_reference(params, ids, values, adj=None):
    emb = params["emb"]
    h = emb[ids] * values[..., None]                         # (B, F, E)
    F = ids.shape[1]
    if adj is None:
        adj = jnp.ones((F, F), dtype=jnp.float32)
    adj_n = normalize_adj(adj.astype(jnp.float32))
    for w, b in params["gcn"]:
        sup = jnp.einsum('bfx,xy->bfy', h, w)
        h = jnp.maximum(jnp.einsum('xy,bye->bxe', adj_n, sup) + b, 0.0)
    x = h.reshape(h.shape[0], -1)
    for w, b in params["mlp"]:
        x = jnp.maximum(x @ w + b, 0.0)
    w_out, b_out = params["mlp_out"]
    return (x @ w_out + b_out)[:, 0]


def xavier_uniform(key, shape):
    fan_in, fan_out = shape
    bound = (6.0 / (fan_in + fan_out)) ** 0.5
    return jax.random.uniform(key, shape, jnp.float32, -bound, bound)


def init_params(key, nfield, nfeat, nemb, gcn_layers, gcn_hid,
                mlp_layers, mlp_hid):
    keys = jax.random.split(key, 2 + gcn_layers + mlp_layers + 1)
    params = {}
    params["emb"] = jax.random.normal(keys[0], (nfeat, nemb), jnp.float32) * 0.1

    ninfeat = nemb
    params["gcn"] = []
    for l in range(gcn_layers):
        w = xavier_uniform(keys[2 + l], (ninfeat, gcn_hid))
        b = jnp.zeros((gcn_hid,), jnp.float32)
        params["gcn"].append((w, b))
        ninfeat = gcn_hid

    params["mlp"] = []
    din = nfield * ninfeat
    for l in range(mlp_layers):
        w = xavier_uniform(keys[2 + gcn_layers + l], (din, mlp_hid))
        b = jnp.zeros((mlp_hid,), jnp.float32)
        params["mlp"].append((w, b))
        din = mlp_hid
    w_out = xavier_uniform(keys[-1], (din, 1))
    b_out = jnp.zeros((1,), jnp.float32)
    params["mlp_out"] = (w_out, b_out)
    return params


# ----------------------------------------------------------------------------
if __name__ == "__main__":
    B = 2          # batch
    nfield = 4     # F (graph nodes = tabular fields)
    nfeat = 16     # embedding vocabulary size
    nemb = 8       # embedding dim
    gcn_layers = 2
    gcn_hid = 16
    mlp_layers = 2
    mlp_hid = 32

    key = jax.random.PRNGKey(0)
    kp, kid, kval = jax.random.split(key, 3)

    params = init_params(kp, nfield, nfeat, nemb, gcn_layers, gcn_hid,
                         mlp_layers, mlp_hid)
    ids = jax.random.randint(kid, (B, nfield), 0, nfeat, dtype=jnp.int32)
    values = jax.random.uniform(kval, (B, nfield), dtype=jnp.float32)

    # Numerical sanity: f32-fed kernel vs pure-JAX reference.
    fwd_f32 = jax.jit(functools.partial(gcn_model_forward,
                                        matmul_dtype=jnp.float32))
    y_f32 = jax.block_until_ready(fwd_f32(params, ids, values))
    y_ref = jax.block_until_ready(gcn_model_reference(params, ids, values))
    assert y_f32.shape == (B,) and y_f32.dtype == jnp.float32
    assert jnp.allclose(y_f32, y_ref, rtol=1e-4, atol=1e-4), (y_f32, y_ref)

    # Default (bf16-fed MXU) path.
    y = jax.block_until_ready(jax.jit(gcn_model_forward)(params, ids, values))
    assert y.shape == (B,) and y.dtype == jnp.float32
    assert bool(jnp.all(jnp.isfinite(y)))
    print("KERNEL_OK")
</pallas_src>

<mosaic_0001>
module attributes {stable_mosaic.version = 11 : i64} {
  func.func @kernel(%arg0: i32, %arg1: memref<8x32xf32, #tpu.memory_space<vmem>>, %arg2: memref<32x64xf32, #tpu.memory_space<vmem>>, %arg3: memref<1x64xf32, #tpu.memory_space<vmem>>, %arg4: memref<64x64xf32, #tpu.memory_space<vmem>>, %arg5: memref<1x64xf32, #tpu.memory_space<vmem>>, %arg6: memref<64x32xf32, #tpu.memory_space<vmem>>, %arg7: memref<1x32xf32, #tpu.memory_space<vmem>>, %arg8: memref<32x32xf32, #tpu.memory_space<vmem>>, %arg9: memref<1x32xf32, #tpu.memory_space<vmem>>, %arg10: memref<1x32xf32, #tpu.memory_space<vmem>>, %arg11: memref<1x1xf32, #tpu.memory_space<vmem>>, %arg12: memref<8x1xf32, #tpu.memory_space<vmem>>) attributes {dimension_semantics = [#tpu.dimension_semantics<parallel>], iteration_bounds = array<i64: 1>, scalar_prefetch = 0 : i64, scratch_operands = 0 : i64, tpu.core_type = #tpu.core_type<tc>, window_params = [{transform_indices = @transform_0, window_bounds = array<i64: 8, 32>}, {pipeline_mode = #tpu.pipeline_mode<synchronous>, transform_indices = @transform_1, window_bounds = array<i64: 32, 64>}, {pipeline_mode = #tpu.pipeline_mode<synchronous>, transform_indices = @transform_2, window_bounds = array<i64: 1, 64>}, {pipeline_mode = #tpu.pipeline_mode<synchronous>, transform_indices = @transform_3, window_bounds = array<i64: 64, 64>}, {pipeline_mode = #tpu.pipeline_mode<synchronous>, transform_indices = @transform_4, window_bounds = array<i64: 1, 64>}, {pipeline_mode = #tpu.pipeline_mode<synchronous>, transform_indices = @transform_5, window_bounds = array<i64: 64, 32>}, {pipeline_mode = #tpu.pipeline_mode<synchronous>, transform_indices = @transform_6, window_bounds = array<i64: 1, 32>}, {pipeline_mode = #tpu.pipeline_mode<synchronous>, transform_indices = @transform_7, window_bounds = array<i64: 32, 32>}, {pipeline_mode = #tpu.pipeline_mode<synchronous>, transform_indices = @transform_8, window_bounds = array<i64: 1, 32>}, {pipeline_mode = #tpu.pipeline_mode<synchronous>, transform_indices = @transform_9, window_bounds = array<i64: 1, 32>}, {pipeline_mode = #tpu.pipeline_mode<synchronous>, transform_indices = @transform_10, window_bounds = array<i64: 1, 1>}, {transform_indices = @transform_11, window_bounds = array<i64: 8, 1>}]} {
    %c0 = arith.constant 0 : index
    %c0_0 = arith.constant 0 : index
    %0 = vector.load %arg1[%c0, %c0_0] : memref<8x32xf32, #tpu.memory_space<vmem>>, vector<8x32xf32>
    %c0_1 = arith.constant 0 : index
    %c0_2 = arith.constant 0 : index
    %1 = vector.load %arg2[%c0_1, %c0_2] : memref<32x64xf32, #tpu.memory_space<vmem>>, vector<32x64xf32>
    %cst = arith.constant dense<0.000000e+00> : vector<8x64xf32>
    %2 = tpu.matmul %0, %1, %cst {dimension_numbers = #tpu.dot_dimension_numbers<[1], [0], [0], [1], [0, 0, 1, 1], [], []>} : vector<8x32xf32>, vector<32x64xf32>, vector<8x64xf32> -> vector<8x64xf32>
    %c0_3 = arith.constant 0 : index
    %c0_4 = arith.constant 0 : index
    %3 = vector.load %arg3[%c0_3, %c0_4] : memref<1x64xf32, #tpu.memory_space<vmem>>, vector<1x64xf32>
    %4 = vector.broadcast %3 : vector<1x64xf32> to vector<8x64xf32>
    %5 = arith.addf %2, %4 : vector<8x64xf32>
    %cst_5 = arith.constant 0.000000e+00 : f32
    %6 = vector.broadcast %cst_5 : f32 to vector<8x64xf32>
    %7 = arith.maximumf %5, %6 : vector<8x64xf32>
    %c0_6 = arith.constant 0 : index
    %c0_7 = arith.constant 0 : index
    %8 = vector.load %arg4[%c0_6, %c0_7] : memref<64x64xf32, #tpu.memory_space<vmem>>, vector<64x64xf32>
    %cst_8 = arith.constant dense<0.000000e+00> : vector<8x64xf32>
    %9 = tpu.matmul %7, %8, %cst_8 {dimension_numbers = #tpu.dot_dimension_numbers<[1], [0], [0], [1], [0, 0, 1, 1], [], []>} : vector<8x64xf32>, vector<64x64xf32>, vector<8x64xf32> -> vector<8x64xf32>
    %c0_9 = arith.constant 0 : index
    %c0_10 = arith.constant 0 : index
    %10 = vector.load %arg5[%c0_9, %c0_10] : memref<1x64xf32, #tpu.memory_space<vmem>>, vector<1x64xf32>
    %11 = vector.broadcast %10 : vector<1x64xf32> to vector<8x64xf32>
    %12 = arith.addf %9, %11 : vector<8x64xf32>
    %cst_11 = arith.constant 0.000000e+00 : f32
    %13 = vector.broadcast %cst_11 : f32 to vector<8x64xf32>
    %14 = arith.maximumf %12, %13 : vector<8x64xf32>
    %c0_12 = arith.constant 0 : index
    %c0_13 = arith.constant 0 : index
    %15 = vector.load %arg6[%c0_12, %c0_13] : memref<64x32xf32, #tpu.memory_space<vmem>>, vector<64x32xf32>
    %cst_14 = arith.constant dense<0.000000e+00> : vector<8x32xf32>
    %16 = tpu.matmul %14, %15, %cst_14 {dimension_numbers = #tpu.dot_dimension_numbers<[1], [0], [0], [1], [0, 0, 1, 1], [], []>} : vector<8x64xf32>, vector<64x32xf32>, vector<8x32xf32> -> vector<8x32xf32>
    %c0_15 = arith.constant 0 : index
    %c0_16 = arith.constant 0 : index
    %17 = vector.load %arg7[%c0_15, %c0_16] : memref<1x32xf32, #tpu.memory_space<vmem>>, vector<1x32xf32>
    %18 = vector.broadcast %17 : vector<1x32xf32> to vector<8x32xf32>
    %19 = arith.addf %16, %18 : vector<8x32xf32>
    %cst_17 = arith.constant 0.000000e+00 : f32
    %20 = vector.broadcast %cst_17 : f32 to vector<8x32xf32>
    %21 = arith.maximumf %19, %20 : vector<8x32xf32>
    %c0_18 = arith.constant 0 : index
    %c0_19 = arith.constant 0 : index
    %22 = vector.load %arg8[%c0_18, %c0_19] : memref<32x32xf32, #tpu.memory_space<vmem>>, vector<32x32xf32>
    %cst_20 = arith.constant dense<0.000000e+00> : vector<8x32xf32>
    %23 = tpu.matmul %21, %22, %cst_20 {dimension_numbers = #tpu.dot_dimension_numbers<[1], [0], [0], [1], [0, 0, 1, 1], [], []>} : vector<8x32xf32>, vector<32x32xf32>, vector<8x32xf32> -> vector<8x32xf32>
    %c0_21 = arith.constant 0 : index
    %c0_22 = arith.constant 0 : index
    %24 = vector.load %arg9[%c0_21, %c0_22] : memref<1x32xf32, #tpu.memory_space<vmem>>, vector<1x32xf32>
    %25 = vector.broadcast %24 : vector<1x32xf32> to vector<8x32xf32>
    %26 = arith.addf %23, %25 : vector<8x32xf32>
    %cst_23 = arith.constant 0.000000e+00 : f32
    %27 = vector.broadcast %cst_23 : f32 to vector<8x32xf32>
    %28 = arith.maximumf %26, %27 : vector<8x32xf32>
    %c0_24 = arith.constant 0 : index
    %c0_25 = arith.constant 0 : index
    %29 = vector.load %arg10[%c0_24, %c0_25] : memref<1x32xf32, #tpu.memory_space<vmem>>, vector<1x32xf32>
    %30 = vector.broadcast %29 : vector<1x32xf32> to vector<8x32xf32>
    %31 = arith.mulf %28, %30 : vector<8x32xf32>
    %cst_26 = arith.constant dense<0.000000e+00> : vector<8xf32>
    %32 = vector.multi_reduction <add>, %31, %cst_26 [1] : vector<8x32xf32> to vector<8xf32>
    %33 = vector.shape_cast %32 : vector<8xf32> to vector<8x1xf32>
    %c0_27 = arith.constant 0 : index
    %c0_28 = arith.constant 0 : index
    %34 = vector.load %arg11[%c0_27, %c0_28] : memref<1x1xf32, #tpu.memory_space<vmem>>, vector<1x1xf32>
    %35 = vector.broadcast %34 : vector<1x1xf32> to vector<8x1xf32>
    %36 = arith.addf %33, %35 : vector<8x1xf32>
    %c0_29 = arith.constant 0 : index
    %c0_30 = arith.constant 0 : index
    %37 = vector.load %arg12[%c0_29, %c0_30] : memref<8x1xf32, #tpu.memory_space<vmem>>, vector<8x1xf32>
    tpu.vector_store %arg12[%c0_29, %c0_30], %36 {strides = array<i32>} : memref<8x1xf32, #tpu.memory_space<vmem>>, vector<8x1xf32>,
    return
  }
  func.func @transform_0(%arg0: i32) -> (i32, i32) {
    %c0_i32 = arith.constant 0 : i32
    %c0_i32_0 = arith.constant 0 : i32
    return %arg0, %c0_i32 : i32, i32
  }
  func.func @transform_1(%arg0: i32) -> (i32, i32) {
    %c0_i32 = arith.constant 0 : i32
    %c0_i32_0 = arith.constant 0 : i32
    %c0_i32_1 = arith.constant 0 : i32
    return %c0_i32, %c0_i32_0 : i32, i32
  }
  func.func @transform_2(%arg0: i32) -> (i32, i32) {
    %c0_i32 = arith.constant 0 : i32
    %c0_i32_0 = arith.constant 0 : i32
    %c0_i32_1 = arith.constant 0 : i32
    return %c0_i32, %c0_i32_0 : i32, i32
  }
  func.func @transform_3(%arg0: i32) -> (i32, i32) {
    %c0_i32 = arith.constant 0 : i32
    %c0_i32_0 = arith.constant 0 : i32
    %c0_i32_1 = arith.constant 0 : i32
    return %c0_i32, %c0_i32_0 : i32, i32
  }
  func.func @transform_4(%arg0: i32) -> (i32, i32) {
    %c0_i32 = arith.constant 0 : i32
    %c0_i32_0 = arith.constant 0 : i32
    %c0_i32_1 = arith.constant 0 : i32
    return %c0_i32, %c0_i32_0 : i32, i32
  }
  func.func @transform_5(%arg0: i32) -> (i32, i32) {
    %c0_i32 = arith.constant 0 : i32
    %c0_i32_0 = arith.constant 0 : i32
    %c0_i32_1 = arith.constant 0 : i32
    return %c0_i32, %c0_i32_0 : i32, i32
  }
  func.func @transform_6(%arg0: i32) -> (i32, i32) {
    %c0_i32 = arith.constant 0 : i32
    %c0_i32_0 = arith.constant 0 : i32
    %c0_i32_1 = arith.constant 0 : i32
    return %c0_i32, %c0_i32_0 : i32, i32
  }
  func.func @transform_7(%arg0: i32) -> (i32, i32) {
    %c0_i32 = arith.constant 0 : i32
    %c0_i32_0 = arith.constant 0 : i32
    %c0_i32_1 = arith.constant 0 : i32
    return %c0_i32, %c0_i32_0 : i32, i32
  }
  func.func @transform_8(%arg0: i32) -> (i32, i32) {
    %c0_i32 = arith.constant 0 : i32
    %c0_i32_0 = arith.constant 0 : i32
    %c0_i32_1 = arith.constant 0 : i32
    return %c0_i32, %c0_i32_0 : i32, i32
  }
  func.func @transform_9(%arg0: i32) -> (i32, i32) {
    %c0_i32 = arith.constant 0 : i32
    %c0_i32_0 = arith.constant 0 : i32
    %c0_i32_1 = arith.constant 0 : i32
    return %c0_i32, %c0_i32_0 : i32, i32
  }
  func.func @transform_10(%arg0: i32) -> (i32, i32) {
    %c0_i32 = arith.constant 0 : i32
    %c0_i32_0 = arith.constant 0 : i32
    %c0_i32_1 = arith.constant 0 : i32
    return %c0_i32, %c0_i32_0 : i32, i32
  }
  func.func @transform_11(%arg0: i32) -> (i32, i32) {
    %c0_i32 = arith.constant 0 : i32
    %c0_i32_0 = arith.constant 0 : i32
    return %arg0, %c0_i32 : i32, i32
  }
}

</mosaic_0001>

<bundles_post_ra>
// kernel: tile.13
= control target key start
LH: loop header
LB: loop body
LE: loop exit
PB: predicated region body
PF: predicated region fallthrough
CT: control target
= control target key end

     0   :  { %s22_s0 = inlined_call_operand.vmem [shape: f32[16], index: 0, kind: input, shape index: {}]   ;;  %s23_s1 = inlined_call_operand.vmem [shape: f32[4,16], index: 1, kind: output, shape index: {}]  }
   0x1   :  { %v4_v0 = vld [vmem:[%s22_s0] ss:$0 sm:$0xff] }
   0x2   :  { %5 = vst [vmem:[%s23_s1] sm:$0xf] %v4_v0 }

// kernel: tile.14
= control target key start
LH: loop header
LB: loop body
LE: loop exit
PB: predicated region body
PF: predicated region fallthrough
CT: control target
= control target key end

     0   :  { %vm8_vm0 = vcmask 130048   ;;  %s40_s8 = smov 16   ;;  %s41_s9 = smov 32   ;;  %vm14_vm1 = vcmask 523648   ;;  %vm20_vm2 = vcmask 392448   ;;  %vm26_vm3 = vcmask 261248   ;;  %s58_s0 = inlined_call_operand.vmem [shape: f32[4,16], index: 0, kind: input, shape index: {}]   ;;  %s59_s1 = inlined_call_operand.vmem [shape: f32[1,64], index: 1, kind: output, shape index: {}]  }
   0x1   :  { %v5_v0 = vld [vmem:[%s58_s0] sm:$0xf]  ;;  %s39_s0 = smov 48  }
   0x2   :  { %6 = vst [vmem:[#allocation1] sm:$0xf] %v5_v0 }
   0x9   :  { %v11_v1 = vld [vmem:[#allocation1 + $0x3] sm:$0x1]   ;;  %v23_v2 = vld [vmem:[#allocation1 + $0x1] sm:$0x1]   ;;  %v7_v3 = vld [vmem:[#allocation1] sm:$0x1]  }
   0xa   :  { %12 = vrot.lane.b32.xlu0 %v11_v1, %s39_s0  ;;  %24 = vrot.lane.b32.xlu1 %v23_v2, %s40_s8  ;;  %v17_v4 = vld [vmem:[#allocation1 + $0x2] sm:$0x1]   ;;  %9 = vst.msk [vmem:[#allocation0] sm:$0x1] %vm8_vm0, %v7_v3  }
   0xe   :  { %18 = vrot.lane.b32.xlu0 %v17_v4, %s41_s9 }
  0x7c   :  { %v13_v5 = vpop.permute.xlu0 %12   ;;  %v25_v6 = vpop.permute.xlu1 %24  }
  0x7d   :  { %15 = vst.msk [vmem:[#allocation0] sm:$0x1] %vm14_vm1, %v13_v5  }
  0x80   :  { %v19_v7 = vpop.permute.xlu0 %18  }
  0x81   :  { %21 = vst.msk [vmem:[#allocation0] sm:$0x1] %vm20_vm2, %v19_v7  }
  0x82   :  { %27 = vst.msk [vmem:[#allocation0] sm:$0x1] %vm26_vm3, %v25_v6  }
  0x89   :  { %v32_v8 = vld [vmem:[#allocation0] sm:$0x1] }
  0x8a   :  { %35 = vst [vmem:[%s59_s1] sm:$0x1] %v32_v8 }

// kernel: gcn_model_forward.1
= control target key start
LH: loop header
LB: loop body
LE: loop exit
PB: predicated region body
PF: predicated region fallthrough
CT: control target
= control target key end

     0   :  { %v516_v0 = vmov 0.0   ;;  %vm517_vm0 = vmmov 0   ;;  %vm52_vm1 = vcmask 261120   ;;  %vm142_vm2 = vcmask 523264   ;;  %s711_s1 = inlined_call_operand.vmem [shape: f32[32,64], index: 1, kind: input, shape index: {}]   ;;  %s712_s3 = inlined_call_operand.vmem [shape: f32[64,64], index: 3, kind: input, shape index: {}]   ;;  %s713_s0 = inlined_call_operand.vmem [shape: f32[8,32], index: 0, kind: input, shape index: {}]   ;;  %s714_s5 = inlined_call_operand.vmem [shape: f32[64,32], index: 5, kind: input, shape index: {}]   ;;  %s715_s2 = inlined_call_operand.vmem [shape: f32[1,64], index: 2, kind: input, shape index: {}]   ;;  %s716_s7 = inlined_call_operand.vmem [shape: f32[32,32], index: 7, kind: input, shape index: {}]   ;;  %s717_s4 = inlined_call_operand.vmem [shape: f32[1,64], index: 4, kind: input, shape index: {}]   ;;  %s718_s6 = inlined_call_operand.vmem [shape: f32[1,32], index: 6, kind: input, shape index: {}]   ;;  %s719_s10 = inlined_call_operand.<no memory space> [shape: f32[1,1], index: 10, kind: input, shape index: {}]   ;;  %s720_s8 = inlined_call_operand.vmem [shape: f32[1,32], index: 8, kind: input, shape index: {}]   ;;  %s721_s9 = inlined_call_operand.vmem [shape: f32[1,32], index: 9, kind: input, shape index: {}]   ;;  %s722_s11 = inlined_call_operand.vmem [shape: f32[8,1], index: 11, kind: output, shape index: {}]  }
   0x1   :  { %454 = vmatprep.subr.mxu0 %v516_v0  ;;  %v44_v1 = vld [vmem:[%s711_s1 + $0x18] sm:$0xff]  ;;  %v43_v2 = vld [vmem:[%s711_s1 + $0x10] sm:$0xff]  ;;  %462 = vmatprep.mubr.msk.f32.mxu0 %vm517_vm0, %v516_v0  ;;  %v42_v4 = vld [vmem:[%s711_s1 + $0x8] sm:$0xff]  ;;  %v16_v41 = vstv %s719_s10  ;;  %vm410_vm3 = vcmask 7168  }
   0x2   :  { %455 = vmatpush3.msra.mxu0 %v44_v1  ;;  %465 = vmatprep.subr.mxu1 %v516_v0  ;;  %v134_v3 = vld [vmem:[%s712_s3 + $0x38] sm:$0xff]  ;;  %v133_v5 = vld [vmem:[%s712_s3 + $0x30] sm:$0xff]  ;;  %v132_v6 = vld [vmem:[%s712_s3 + $0x28] sm:$0xff]  ;;  %17 = vst [vmem:[#allocation2] sm:$0x1] %v16_v41 }
   0x3   :  { %456 = vmatprep.subr.mxu0 %v516_v0  ;;  %466 = vmatpush3.msra.mxu1 %v134_v3  ;;  %v41_v7 = vld [vmem:[%s711_s1] sm:$0xff]  ;;  %v130_v10 = vld [vmem:[%s712_s3 + $0x18] sm:$0xff]  ;;  %v129_v11 = vld [vmem:[%s712_s3 + $0x10] sm:$0xff] }
   0x4   :  { %457 = vmatpush3.msra.mxu0 %v43_v2  ;;  %467 = vmatprep.subr.mxu1 %v516_v0  ;;  %v40_v8 = vld [vmem:[%s713_s0] sm:$0xff]  ;;  %v128_v12 = vld [vmem:[%s712_s3 + $0x8] sm:$0xff]  ;;  %v224_v14 = vld [vmem:[%s714_s5 + $0x38] sm:$0xff] }
   0x5   :  { %458 = vmatprep.subr.mxu0 %v516_v0  ;;  %468 = vmatpush3.msra.mxu1 %v133_v5  ;;  %v131_v9 = vld [vmem:[%s712_s3 + $0x20] sm:$0xff]  ;;  %v223_v15 = vld [vmem:[%s714_s5 + $0x30] sm:$0xff]  ;;  %v222_v16 = vld [vmem:[%s714_s5 + $0x28] sm:$0xff] }
   0x6   :  { %459 = vmatpush3.msra.mxu0 %v42_v4  ;;  %469 = vmatprep.subr.mxu1 %v516_v0  ;;  %v127_v13 = vld [vmem:[%s712_s3] sm:$0xff]  ;;  %v220_v18 = vld [vmem:[%s714_s5 + $0x18] sm:$0xff]  ;;  %v219_v24 = vld [vmem:[%s714_s5 + $0x10] sm:$0xff] }
   0x7   :  { %460 = vmatprep.subr.mxu0 %v516_v0  ;;  %470 = vmatpush3.msra.mxu1 %v132_v6  ;;  %v221_v17 = vld [vmem:[%s714_s5 + $0x20] sm:$0xff]  ;;  %v218_v25 = vld [vmem:[%s714_s5 + $0x8] sm:$0xff]  ;;  %v309_v27 = vld [vmem:[%s716_s7 + $0x18] sm:$0xff] }
   0x8   :  { %461 = vmatpush3.msra.mxu0 %v41_v7  ;;  %471 = vmatprep.subr.mxu1 %v516_v0  ;;  %v416_v19 = vld [vmem:[%s715_s2] ss:$0 sm:$0xff]  ;;  %v308_v33 = vld [vmem:[%s716_s7 + $0x10] sm:$0xff]  ;;  %v307_v34 = vld [vmem:[%s716_s7 + $0x8] sm:$0xff] }
   0x9   :  { %463 = vmatmul.mubr.msk.f32.vlgmr.msra.gmra.mxu0 %vm52_vm1, %v40_v8  ;;  %472 = vmatpush3.msra.mxu1 %v131_v9  ;;  %v217_v26 = vld [vmem:[%s714_s5] sm:$0xff] }
   0xa   :  { %473 = vmatprep.subr.mxu1 %v516_v0  ;;  %481 = vmatprep.mubr.msk.f32.mxu1 %vm517_vm0, %v516_v0  ;;  %v418_v28 = vld [vmem:[%s717_s4] ss:$0 sm:$0xff] }
   0xb   :  { %474 = vmatpush3.msra.mxu1 %v130_v10  ;;  %484 = vmatprep.subr.mxu0 %v516_v0  ;;  %v306_v35 = vld [vmem:[%s716_s7] sm:$0xff] }
   0xc   :  { %475 = vmatprep.subr.mxu1 %v516_v0  ;;  %500 = vmatprep.mubr.msk.f32.mxu0 %vm517_vm0, %v516_v0  ;;  %v420_v36 = vld [vmem:[%s718_s6] ss:$0 sm:$0xff] }
   0xd   :  { %476 = vmatpush3.msra.mxu1 %v129_v11  ;;  %485 = vmatpush3.msra.mxu0 %v224_v14  ;;  %v422_v42 = vld [vmem:[%s720_s8] ss:$0 sm:$0xff] }
   0xe   :  { %477 = vmatprep.subr.mxu1 %v516_v0  ;;  %486 = vmatprep.subr.mxu0 %v516_v0  ;;  %v424_v46 = vld [vmem:[%s721_s9] ss:$0 sm:$0xff] }
   0xf   :  { %478 = vmatpush3.msra.mxu1 %v128_v12  ;;  %487 = vmatpush3.msra.mxu0 %v223_v15  ;;  %v425_v50 = vld [vmem:[#allocation2] ss:$0 sm:$0xff] }
  0x10   :  { %479 = vmatprep.subr.mxu1 %v516_v0  ;;  %488 = vmatprep.subr.mxu0 %v516_v0 }
  0x11   :  { %480 = vmatpush3.msra.mxu1 %v127_v13  ;;  %489 = vmatpush3.msra.mxu0 %v222_v16 }
  0x12   :  { %503 = vmatprep.subr.mxu1 %v516_v0  ;;  %490 = vmatprep.subr.mxu0 %v516_v0 }
  0x13   :  { %491 = vmatpush3.msra.mxu0 %v221_v17 }
  0x14   :  { %492 = vmatprep.subr.mxu0 %v516_v0 }
  0x15   :  { %493 = vmatpush3.msra.mxu0 %v220_v18 }
  0x16   :  { %494 = vmatprep.subr.mxu0 %v516_v0 }
  0x17   :  { %495 = vmatpush3.msra.mxu0 %v219_v24 }
  0x18   :  { %496 = vmatprep.subr.mxu0 %v516_v0 }
  0x19   :  { %497 = vmatpush3.msra.mxu0 %v218_v25 }
  0x1a   :  { %498 = vmatprep.subr.mxu0 %v516_v0 }
  0x1b   :  { %499 = vmatpush3.msra.mxu0 %v217_v26 }
  0xc9   :  { %v122_v20 = vpop.f32.mrf.mxu0 }
  0xca   :  { %v123_v21 = vadd.f32 %v416_v19, %v122_v20 }
  0xcb   :  { %v464_v22 = vpop.f32.mrf.mxu0 }
  0xcc   :  { %v126_v23 = vmax.f32 %v123_v21, 0.0 }
  0xce   :  { %482 = vmatmul.mubr.msk.f32.vlgmr.msra.gmra.mxu1 %vm142_vm2, %v126_v23 }
  0xcf   :  { %511 = vmatprep.mubr.msk.f32.mxu1 %vm517_vm0, %v516_v0  ;;  %504 = vmatpush3.msra.mxu1 %v309_v27 }
  0xd0   :  { %505 = vmatprep.subr.mxu1 %v516_v0 }
  0xd1   :  { %506 = vmatpush3.msra.mxu1 %v308_v33 }
  0xd2   :  { %507 = vmatprep.subr.mxu1 %v516_v0 }
  0xd3   :  { %508 = vmatpush3.msra.mxu1 %v307_v34 }
  0xd4   :  { %509 = vmatprep.subr.mxu1 %v516_v0 }
  0xd5   :  { %510 = vmatpush3.msra.mxu1 %v306_v35 }
 0x18e   :  { %v212_v29 = vpop.f32.mrf.mxu1 }
 0x18f   :  { %v213_v30 = vadd.f32 %v418_v28, %v212_v29 }
 0x190   :  { %v483_v31 = vpop.f32.mrf.mxu1 }
 0x191   :  { %v216_v32 = vmax.f32 %v213_v30, 0.0 }
 0x193   :  { %501 = vmatmul.mubr.msk.f32.vlgmr.msra.gmra.mxu0 %vm142_vm2, %v216_v32 }
 0x253   :  { %v301_v37 = vpop.f32.mrf.mxu0 }
 0x254   :  { %v302_v38 = vadd.f32 %v420_v36, %v301_v37 }
 0x255   :  { %v502_v39 = vpop.f32.mrf.mxu0 }
 0x256   :  { %v305_v40 = vmax.f32 %v302_v38, 0.0 }
 0x258   :  { %512 = vmatmul.mubr.msk.f32.vlgmr.msra.gmra.mxu1 %vm52_vm1, %v305_v40 }
 0x318   :  { %v386_v43 = vpop.f32.mrf.mxu1 }
 0x319   :  { %v387_v44 = vadd.f32 %v422_v42, %v386_v43 }
 0x31a   :  { %v513_v45 = vpop.f32.mrf.mxu1 }
 0x31b   :  { %v390_v47 = vmax.f32 %v387_v44, 0.0 }
 0x31d   :  { %v398_v48 = vmul.f32 %v424_v46, %v390_v47 }
 0x31f   :  { %v399_v49 = vsel %vm52_vm1, %v398_v48, 0.0 }
 0x320   :  { %400 = vadd.xlane.f32.xlu0 %v399_v49 }
 0x3a9   :  { %v401_v51 = vpop.xlane.xlu0 %400 }
 0x3aa   :  { %v409_v52 = vadd.f32 %v425_v50, %v401_v51 }
 0x3ac   :  { %411 = vst.msk [vmem:[%s722_s11] sm:$0xff] %vm410_vm3, %v409_v52 }

</bundles_post_ra>
